<compile_context>
chip_gen: v7x
topology: tpu7x:2x2x1
jax: 0.10.0
libtpu: 0.0.40
codegen_flags: <defaults>
</compile_context>

<pallas_src>
import functools

import jax
import jax.numpy as jnp
from jax.experimental import pallas as pl
from jax.experimental.pallas import tpu as pltpu


def _spatial_tile(m, c, dtype_bytes, target_bytes=2 << 20):
    """Largest lane tile that divides m, is a multiple of 128 and keeps a
    (C, TM) block around `target_bytes`."""
    cap = max(128, target_bytes // max(1, c * dtype_bytes))
    if m <= cap:
        return m
    t = (cap // 128) * 128
    while t >= 128:
        if m % t == 0:
            return t
        t -= 128
    return m  # fallback: whole spatial extent (correctness first)


# ---------------------------------------------------------------------------
# Kernel 1: global average pool (accumulated over spatial tiles)
#           + 1x1 fc (C x C mat-vec) + sigmoid  ->  per-batch gate.
# ---------------------------------------------------------------------------
def _gate_kernel(x_ref, wt_ref, b_ref, gate_ref, acc_ref, *, inv_m):
    # x_ref:    (1, C, TM)     spatial tile; channels on sublanes, spatial on lanes
    # wt_ref:   (C_in, C_out)  fc weight already transposed (k on sublanes)
    # b_ref:    (1, C_out)     fc bias
    # gate_ref: (1, 1, C_out)  per-batch sigmoid gate (written on last tile)
    # acc_ref:  (C, 1) f32     running per-channel spatial sum
    t = pl.program_id(1)

    @pl.when(t == 0)
    def _():
        acc_ref[...] = jnp.zeros_like(acc_ref)

    x = x_ref[0].astype(jnp.float32)                        # (C, TM)
    acc_ref[...] += jnp.sum(x, axis=1, keepdims=True)       # lane reduce -> (C, 1)

    @pl.when(t == pl.num_programs(1) - 1)
    def _():
        pooled = acc_ref[...] * inv_m                       # (C_in, 1)
        # z[c_out] = sum_k W[c_out, k] * pooled[k]   (bcast-mul + sublane reduce)
        prod = wt_ref[...] * pooled                         # (C_in, C_out)
        z = jnp.sum(prod, axis=0, keepdims=True) + b_ref[...]   # (1, C_out)
        gate_ref[...] = jax.nn.sigmoid(z)[None].astype(gate_ref.dtype)


# ---------------------------------------------------------------------------
# Kernel 2: broadcast the per-channel gate over the spatial lanes.
# ---------------------------------------------------------------------------
def _apply_kernel(x_ref, gate_ref, o_ref):
    # x_ref: (1, C, TM), gate_ref: (1, C, 1), o_ref: (1, C, TM)
    o_ref[...] = (x_ref[...].astype(jnp.float32) * gate_ref[...]).astype(o_ref.dtype)


def channel_attention(x_nchw, w, b):
    """x_nchw: (N, C, H, W); w: (C_out, C_in) 1x1-conv weight; b: (C_out,)."""
    N, C, H, W = x_nchw.shape
    M = H * W
    x = x_nchw.reshape(N, C, M)                  # free view; spatial -> lanes
    TM = _spatial_tile(M, C, x.dtype.itemsize)
    n_t = M // TM

    w_t = jnp.asarray(w, jnp.float32).T          # (C_in, C_out)
    b_row = jnp.asarray(b, jnp.float32).reshape(1, C)

    gate = pl.pallas_call(
        functools.partial(_gate_kernel, inv_m=1.0 / M),
        out_shape=jax.ShapeDtypeStruct((N, 1, C), jnp.float32),
        grid=(N, n_t),
        in_specs=[
            pl.BlockSpec((1, C, TM), lambda n, t: (n, 0, t)),
            pl.BlockSpec((C, C), lambda n, t: (0, 0)),
            pl.BlockSpec((1, C), lambda n, t: (0, 0)),
        ],
        out_specs=pl.BlockSpec((1, 1, C), lambda n, t: (n, 0, 0)),
        scratch_shapes=[pltpu.VMEM((C, 1), jnp.float32)],
        compiler_params=pltpu.CompilerParams(
            dimension_semantics=("parallel", "arbitrary")),
    )(x, w_t, b_row)

    # (N,1,C) and (N,C,1) have identical row-major layout -> free reshape.
    gate_c = gate.reshape(N, C, 1)

    out = pl.pallas_call(
        _apply_kernel,
        out_shape=jax.ShapeDtypeStruct((N, C, M), x.dtype),
        grid=(N, n_t),
        in_specs=[
            pl.BlockSpec((1, C, TM), lambda n, t: (n, 0, t)),
            pl.BlockSpec((1, C, 1), lambda n, t: (n, 0, 0)),
        ],
        out_specs=pl.BlockSpec((1, C, TM), lambda n, t: (n, 0, t)),
        compiler_params=pltpu.CompilerParams(
            dimension_semantics=("parallel", "parallel")),
    )(x, gate_c)

    return out.reshape(N, C, H, W)


channel_attention_jit = jax.jit(channel_attention)


# ---------------------------------------------------------------------------
# Pure-JAX reference (verification only).
# ---------------------------------------------------------------------------
def channel_attention_ref(x, w, b):
    pooled = jnp.mean(x, axis=(2, 3), keepdims=True)                   # (N,C,1,1)
    z = jnp.einsum("ncij,kc->nkij", pooled, w) + b[None, :, None, None]
    return x * jax.nn.sigmoid(z)


if __name__ == "__main__":
    # Shapes consistent with ChannelAttention(channels=4): x = (2, 4, 16, 16)
    N, C, H, W = 2, 4, 16, 16
    key = jax.random.PRNGKey(0)
    kx, kw, kb = jax.random.split(key, 3)
    x = jax.random.normal(kx, (N, C, H, W), jnp.float32)
    w = 0.3 * jax.random.normal(kw, (C, C), jnp.float32)   # Conv2d(C, C, 1) weight
    b = 0.1 * jax.random.normal(kb, (C,), jnp.float32)     # Conv2d bias

    out = channel_attention_jit(x, w, b)
    out = jax.block_until_ready(out)
    assert out.shape == (N, C, H, W), out.shape

    ref = channel_attention_ref(x, w, b)
    assert jnp.allclose(out, ref, atol=1e-5, rtol=1e-5), \
        float(jnp.max(jnp.abs(out - ref)))

    print("KERNEL_OK")
</pallas_src>

<mosaic_0001>
module attributes {stable_mosaic.version = 11 : i64} {
  func.func @_gate_kernel(%arg0: i32, %arg1: i32, %arg2: memref<1x4x256xf32, #tpu.memory_space<vmem>>, %arg3: memref<4x4xf32, #tpu.memory_space<vmem>>, %arg4: memref<1x4xf32, #tpu.memory_space<vmem>>, %arg5: memref<1x1x4xf32, #tpu.memory_space<vmem>>, %arg6: memref<4x1xf32, #tpu.memory_space<vmem>>) attributes {dimension_semantics = [#tpu.dimension_semantics<parallel>, #tpu.dimension_semantics<arbitrary>], iteration_bounds = array<i64: 2, 1>, scalar_prefetch = 0 : i64, scratch_operands = 1 : i64, tpu.core_type = #tpu.core_type<tc>, window_params = [{transform_indices = @transform_0, window_bounds = array<i64: 1, 4, 256>}, {pipeline_mode = #tpu.pipeline_mode<synchronous>, transform_indices = @transform_1, window_bounds = array<i64: 4, 4>}, {pipeline_mode = #tpu.pipeline_mode<synchronous>, transform_indices = @transform_2, window_bounds = array<i64: 1, 4>}, {transform_indices = @transform_3, window_bounds = array<i64: 1, 1, 4>}]} {
    %c0_i32 = arith.constant 0 : i32
    %0 = arith.cmpi eq, %arg1, %c0_i32 : i32
    %1 = arith.extui %0 : i1 to i32
    %c0_i32_0 = arith.constant 0 : i32
    %2 = arith.cmpi ne, %1, %c0_i32_0 : i32
    scf.if %2 {
      %cst_9 = arith.constant 0.000000e+00 : f32
      %13 = vector.broadcast %cst_9 : f32 to vector<4x1xf32>
      %c0_10 = arith.constant 0 : index
      %c0_11 = arith.constant 0 : index
      %14 = vector.load %arg6[%c0_10, %c0_11] : memref<4x1xf32, #tpu.memory_space<vmem>>, vector<4x1xf32>
      tpu.vector_store %arg6[%c0_10, %c0_11], %13 {strides = array<i32>} : memref<4x1xf32, #tpu.memory_space<vmem>>, vector<4x1xf32>,
    } else {
    }
    %c0 = arith.constant 0 : index
    %c0_1 = arith.constant 0 : index
    %c0_2 = arith.constant 0 : index
    %3 = vector.load %arg2[%c0, %c0_1, %c0_2] : memref<1x4x256xf32, #tpu.memory_space<vmem>>, vector<1x4x256xf32>
    %4 = vector.shape_cast %3 : vector<1x4x256xf32> to vector<4x256xf32>
    %c0_3 = arith.constant 0 : index
    %c0_4 = arith.constant 0 : index
    %5 = vector.load %arg6[%c0_3, %c0_4] : memref<4x1xf32, #tpu.memory_space<vmem>>, vector<4x1xf32>
    %cst = arith.constant dense<0.000000e+00> : vector<4xf32>
    %6 = vector.multi_reduction <add>, %4, %cst [1] : vector<4x256xf32> to vector<4xf32>
    %7 = vector.shape_cast %6 : vector<4xf32> to vector<4x1xf32>
    %8 = arith.addf %5, %7 : vector<4x1xf32>
    %c0_5 = arith.constant 0 : index
    %c0_6 = arith.constant 0 : index
    %9 = vector.load %arg6[%c0_5, %c0_6] : memref<4x1xf32, #tpu.memory_space<vmem>>, vector<4x1xf32>
    tpu.vector_store %arg6[%c0_5, %c0_6], %8 {strides = array<i32>} : memref<4x1xf32, #tpu.memory_space<vmem>>, vector<4x1xf32>,
    %c0_i32_7 = arith.constant 0 : i32
    %10 = arith.cmpi eq, %arg1, %c0_i32_7 : i32
    %11 = arith.extui %10 : i1 to i32
    %c0_i32_8 = arith.constant 0 : i32
    %12 = arith.cmpi ne, %11, %c0_i32_8 : i32
    scf.if %12 {
      %c0_9 = arith.constant 0 : index
      %c0_10 = arith.constant 0 : index
      %13 = vector.load %arg6[%c0_9, %c0_10] : memref<4x1xf32, #tpu.memory_space<vmem>>, vector<4x1xf32>
      %cst_11 = arith.constant 3.906250e-03 : f32
      %14 = vector.broadcast %cst_11 : f32 to vector<4x1xf32>
      %15 = arith.mulf %13, %14 : vector<4x1xf32>
      %c0_12 = arith.constant 0 : index
      %c0_13 = arith.constant 0 : index
      %16 = vector.load %arg3[%c0_12, %c0_13] : memref<4x4xf32, #tpu.memory_space<vmem>>, vector<4x4xf32>
      %17 = vector.broadcast %15 : vector<4x1xf32> to vector<4x4xf32>
      %18 = arith.mulf %16, %17 : vector<4x4xf32>
      %cst_14 = arith.constant dense<0.000000e+00> : vector<4xf32>
      %19 = vector.multi_reduction <add>, %18, %cst_14 [0] : vector<4x4xf32> to vector<4xf32>
      %20 = vector.shape_cast %19 : vector<4xf32> to vector<1x4xf32>
      %c0_15 = arith.constant 0 : index
      %c0_16 = arith.constant 0 : index
      %21 = vector.load %arg4[%c0_15, %c0_16] : memref<1x4xf32, #tpu.memory_space<vmem>>, vector<1x4xf32>
      %22 = arith.addf %20, %21 : vector<1x4xf32>
      %23 = arith.negf %22 : vector<1x4xf32>
      %24 = math.exp %23 : vector<1x4xf32>
      %cst_17 = arith.constant 1.000000e+00 : f32
      %25 = vector.broadcast %cst_17 : f32 to vector<1x4xf32>
      %26 = arith.addf %25, %24 : vector<1x4xf32>
      %27 = arith.divf %25, %26 : vector<1x4xf32>
      %28 = vector.shape_cast %27 : vector<1x4xf32> to vector<1x1x4xf32>
      %c0_18 = arith.constant 0 : index
      %c0_19 = arith.constant 0 : index
      %c0_20 = arith.constant 0 : index
      %29 = vector.load %arg5[%c0_18, %c0_19, %c0_20] : memref<1x1x4xf32, #tpu.memory_space<vmem>>, vector<1x1x4xf32>
      tpu.vector_store %arg5[%c0_18, %c0_19, %c0_20], %28 {strides = array<i32>} : memref<1x1x4xf32, #tpu.memory_space<vmem>>, vector<1x1x4xf32>,
    } else {
    }
    return
  }
  func.func @transform_0(%arg0: i32, %arg1: i32) -> (i32, i32, i32) {
    %c0_i32 = arith.constant 0 : i32
    %c0_i32_0 = arith.constant 0 : i32
    return %arg0, %c0_i32, %arg1 : i32, i32, i32
  }
  func.func @transform_1(%arg0: i32, %arg1: i32) -> (i32, i32) {
    %c0_i32 = arith.constant 0 : i32
    %c0_i32_0 = arith.constant 0 : i32
    %c0_i32_1 = arith.constant 0 : i32
    return %c0_i32, %c0_i32_0 : i32, i32
  }
  func.func @transform_2(%arg0: i32, %arg1: i32) -> (i32, i32) {
    %c0_i32 = arith.constant 0 : i32
    %c0_i32_0 = arith.constant 0 : i32
    %c0_i32_1 = arith.constant 0 : i32
    return %c0_i32, %c0_i32_0 : i32, i32
  }
  func.func @transform_3(%arg0: i32, %arg1: i32) -> (i32, i32, i32) {
    %c0_i32 = arith.constant 0 : i32
    %c0_i32_0 = arith.constant 0 : i32
    %c0_i32_1 = arith.constant 0 : i32
    return %arg0, %c0_i32, %c0_i32_0 : i32, i32, i32
  }
}

module attributes {stable_mosaic.version = 11 : i64} {
  func.func @_apply_kernel(%arg0: i32, %arg1: i32, %arg2: memref<1x4x256xf32, #tpu.memory_space<vmem>>, %arg3: memref<1x4x1xf32, #tpu.memory_space<vmem>>, %arg4: memref<1x4x256xf32, #tpu.memory_space<vmem>>) attributes {dimension_semantics = [#tpu.dimension_semantics<parallel>, #tpu.dimension_semantics<parallel>], iteration_bounds = array<i64: 2, 1>, scalar_prefetch = 0 : i64, scratch_operands = 0 : i64, tpu.core_type = #tpu.core_type<tc>, window_params = [{transform_indices = @transform_0, window_bounds = array<i64: 1, 4, 256>}, {transform_indices = @transform_1, window_bounds = array<i64: 1, 4, 1>}, {transform_indices = @transform_2, window_bounds = array<i64: 1, 4, 256>}]} {
    %c0 = arith.constant 0 : index
    %c0_0 = arith.constant 0 : index
    %c0_1 = arith.constant 0 : index
    %0 = vector.load %arg2[%c0, %c0_0, %c0_1] : memref<1x4x256xf32, #tpu.memory_space<vmem>>, vector<1x4x256xf32>
    %c0_2 = arith.constant 0 : index
    %c0_3 = arith.constant 0 : index
    %c0_4 = arith.constant 0 : index
    %1 = vector.load %arg3[%c0_2, %c0_3, %c0_4] : memref<1x4x1xf32, #tpu.memory_space<vmem>>, vector<1x4x1xf32>
    %2 = vector.broadcast %1 : vector<1x4x1xf32> to vector<1x4x256xf32>
    %3 = arith.mulf %0, %2 : vector<1x4x256xf32>
    %c0_5 = arith.constant 0 : index
    %c0_6 = arith.constant 0 : index
    %c0_7 = arith.constant 0 : index
    %4 = vector.load %arg4[%c0_5, %c0_6, %c0_7] : memref<1x4x256xf32, #tpu.memory_space<vmem>>, vector<1x4x256xf32>
    tpu.vector_store %arg4[%c0_5, %c0_6, %c0_7], %3 {strides = array<i32>} : memref<1x4x256xf32, #tpu.memory_space<vmem>>, vector<1x4x256xf32>,
    return
  }
  func.func @transform_0(%arg0: i32, %arg1: i32) -> (i32, i32, i32) {
    %c0_i32 = arith.constant 0 : i32
    %c0_i32_0 = arith.constant 0 : i32
    return %arg0, %c0_i32, %arg1 : i32, i32, i32
  }
  func.func @transform_1(%arg0: i32, %arg1: i32) -> (i32, i32, i32) {
    %c0_i32 = arith.constant 0 : i32
    %c0_i32_0 = arith.constant 0 : i32
    %c0_i32_1 = arith.constant 0 : i32
    return %arg0, %c0_i32, %c0_i32_0 : i32, i32, i32
  }
  func.func @transform_2(%arg0: i32, %arg1: i32) -> (i32, i32, i32) {
    %c0_i32 = arith.constant 0 : i32
    %c0_i32_0 = arith.constant 0 : i32
    return %arg0, %c0_i32, %arg1 : i32, i32, i32
  }
}

</mosaic_0001>

<bundles_post_ra>
// kernel: channel_attention.3
= control target key start
LH: loop header
LB: loop body
LE: loop exit
PB: predicated region body
PF: predicated region fallthrough
CT: control target
= control target key end

     0   :  { %s397_s9 = smov 0   ;;  %s399_s10 = smov 0   ;;  %s430_s0 = inlined_call_operand.vmem [shape: f32[2,4,256], index: 0, kind: input, shape index: {}]   ;;  %s431_s1 = inlined_call_operand.vmem [shape: f32[2,4,1], index: 1, kind: input, shape index: {}]   ;;  %s432_s2 = inlined_call_operand.vmem [shape: f32[2,4,256], index: 2, kind: output, shape index: {}]  }
   0x1   :  { %s401_s11 = smov 0  }
   0x2 LB: > { %s24_s12 = sadd.s32 1, %s374_s10  ;;  %p319_p0 = scmp.ge.s32.totalorder %s378_s11, 1  ;;  %s378_s11 = sphi %s401_s11, %s12_s11   ;;  %s374_s10 = sphi %s399_s10, %s434_s10   ;;  %s370_s9 = sphi %s397_s9, %s433_s9  }
   0x3   : > { %p26_p1 = scmp.ge.s32.totalorder %s24_s12, 2  ;;  %p142_p2 = scmp.lt.s32.totalorder %s378_s11, 3 }
   0x5   : > { %s436_s12 = smov (%p26_p1, %s24_s12), 0  ;;  %p143_p3 = pnand %p319_p0, %p142_p2 }
   0x6   : > { %p177_p4 = scmp.lt.s32.totalorder (!%p143_p3), %s370_s9, 1  ;;  %v380_v0 = vmov (!%p143_p3), 0   ;;  %v381_v2 = vmov (!%p143_p3), 839922192   ;;  %v209_v4 = vlaneseq (!%p143_p3) }
   0x7   : > { %146 = sbr.rel (%p143_p3) target bundleno = 151 (0x97), region = 28  ;;  %355 = vset.pattern.permute.xlu0 (!%p143_p3), %v380_v0  ;;  %v207_v3 = vunpack.c.l.s4 (!%p143_p3), %v381_v2 }
   0x8   : > { %v210_v6 = vshrl.u32 (!%p143_p3), %v209_v4, 7 }
   0x9   : > { %v208_v5 = vunpack.c.0.s8 (!%p143_p3), %v207_v3 }
   0xb   : > { %v211_v7 = vsub.s32 (!%p143_p3), %v208_v5, %v210_v6 }
   0xe   : > { %s438_s9 = smov (!%p177_p4, %s370_s9), 1 }
   0xf   : > { %s322_s13 = sshll.u32 %s438_s9, 2  ;;  %s327_s17 = sshll.u32 %s438_s9, 3 }
  0x10   : > { %s189_s16 = scalar_lea.vmem %s431_s1, %s322_s13  ;;  %s184_s20 = scalar_lea.vmem %s430_s0, %s327_s17 }
  0x11   : > { %v201_v1 = vld [vmem:[%s189_s16] sm:$0xf]  ;;  %s198_s23 = scalar_lea.vmem %s432_s2, %s327_s17 }
  0x12   : > { %204 = vperm.xlu0 %355, %v201_v1   ;;  %v200_v9 = vld [vmem:[%s184_s20] sm:$0xff] }
  0x91   : > { %v205_v8 = vpop.permute.xlu0 %204 }
  0x92   : > { %v212_v10 = vrot.slane %v205_v8, %v211_v7 }
  0x94   : > { %v214_v11 = vmul.f32 %v212_v10, %v200_v9 }
  0x96   : > { %215 = vst [vmem:[%s198_s23] sm:$0xff] %v214_v11 }
  0x97 PF: > { %s12_s11 = sadd.s32 1, %s378_s11   ;;  %s433_s9 = smov %s374_s10 }
  0x98   : > { %p9_p5 = scmp.ge.s32.totalorder %s12_s11, 4   ;;  %s434_s10 = smov %s436_s12 }
  0x9a   :  { %11 = sbr.rel (!%p9_p5) target bundleno = 2 (0x2), region = 61 }

// kernel: channel_attention.2
= control target key start
LH: loop header
LB: loop body
LE: loop exit
PB: predicated region body
PF: predicated region fallthrough
CT: control target
= control target key end

     0   :  { %s395_s12 = smov 0   ;;  %s397_s13 = smov 0   ;;  %s440_s0 = inlined_call_operand.vmem [shape: f32[2,4,256], index: 0, kind: input, shape index: {}]   ;;  %s441_s1 = inlined_call_operand.vmem [shape: f32[4,4], index: 1, kind: input, shape index: {}]   ;;  %s442_s2 = inlined_call_operand.vmem [shape: f32[1,4], index: 2, kind: input, shape index: {}]   ;;  %s443_s3 = inlined_call_operand.vmem [shape: f32[2,1,4], index: 3, kind: output, shape index: {}]  }
   0x1   :  { %s399_s14 = smov 0  }
   0x2 LB: > { %s25_s15 = sadd.s32 1, %s367_s13  ;;  %p310_p0 = scmp.ge.s32.totalorder %s371_s14, 1  ;;  %s371_s14 = sphi %s399_s14, %s13_s14   ;;  %s367_s13 = sphi %s397_s13, %s445_s13   ;;  %s363_s12 = sphi %s395_s12, %s444_s12  }
   0x3   : > { %p27_p1 = scmp.ge.s32.totalorder %s25_s15, 2  ;;  %p156_p2 = scmp.lt.s32.totalorder %s371_s14, 3 }
   0x5   : > { %s447_s15 = smov (%p27_p1, %s25_s15), 0  ;;  %p157_p3 = pnand %p310_p0, %p156_p2 }
   0x6   : > { %p183_p4 = scmp.lt.s32.totalorder (!%p157_p3), %s363_s12, 1  ;;  %vm199_vm0 = vcmask (!%p157_p3), 3072   ;;  %v373_v0 = vmov (!%p157_p3), 0.0   ;;  %vm206_vm1 = vcmask (!%p157_p3), 1043456   ;;  %v374_v6 = vmov (!%p157_p3), 0  }
   0x7   : > { %160 = sbr.rel (%p157_p3) target bundleno = 349 (0x15d), region = 32  ;;  %200 = vst.msk [vmem:[#allocation2] sm:$0xf] (!%p157_p3), %vm199_vm0, %v373_v0  ;;  %343 = vset.pattern.permute.xlu0 (!%p157_p3), %v374_v6  ;;  %v220_v12 = vld [vmem:[%s441_s1] sm:$0xf] (!%p157_p3)  ;;  %vm227_vm2 = vcmask (!%p157_p3), 27648  }
   0x8   : > { %v235_v21 = vld [vmem:[%s442_s2] sm:$0x1] (!%p157_p3)  ;;  %vm243_vm3 = vcmask (!%p157_p3), 24576  }
   0xe   : > { %s449_s12 = smov (!%p183_p4, %s363_s12), 1  ;;  %v202_v7 = vld [vmem:[#allocation2] sm:$0xf] }
   0xf   : > { %s316_s16 = sshll.u32 %s449_s12, 3  ;;  %s194_s26 = scalar_lea.vmem %s443_s3, %s449_s12 }
  0x10   : > { %s190_s19 = scalar_lea.vmem %s440_s0, %s316_s16 }
  0x11   : > { %v201_v1 = vld [vmem:[%s190_s19] sm:$0xff] }
  0x12   : > { %v204_v2 = vcombine.high %v201_v1, %v201_v1  ;;  %v207_v3 = vsel %vm206_vm1, %v201_v1, 0.0 }
  0x14   : > { %v208_v4 = vsel %vm206_vm1, %v204_v2, 0.0 }
  0x15   : > { %v209_v5 = vadd.f32 %v208_v4, %v207_v3 }
  0x17   : > { %210 = vadd.xlane.f32.xlu0 %v209_v5 }
  0xa4   : > { %v211_v8 = vpop.xlane.xlu0 %210 }
  0xa5   : > { %v212_v9 = vadd.f32 %v211_v8, %v202_v7 }
  0xa7   : > { %214 = vst.msk [vmem:[#allocation2] sm:$0xf] %vm199_vm0, %v212_v9 }
  0xae   : > { %v218_v10 = vld [vmem:[#allocation2] sm:$0xf] }
  0xaf   : > { %v219_v11 = vmul.f32 0.00390625, %v218_v10 }
  0xb1   : > { %223 = vperm.xlu0 %343, %v219_v11  }
 0x130   : > { %v224_v13 = vpop.permute.xlu0 %223 }
 0x131   : > { %v226_v14 = vmul.f32 %v224_v13, %v220_v12 }
 0x133   : > { %v228_v15 = vsel %vm227_vm2, %v226_v14, 0.0 }
 0x134   : > { %v229_v16 = vrot.slane %v228_v15, 4 }
 0x136   : > { %v230_v17 = vadd.f32 %v229_v16, %v228_v15 }
 0x138   : > { %v231_v18 = vrot.slane %v230_v17, 2 }
 0x13a   : > { %v232_v19 = vadd.f32 %v231_v18, %v230_v17 }
 0x13c   : > { %v233_v20 = vrot.slane %v232_v19, 1 }
 0x13e   : > { %v234_v22 = vadd.f32 %v233_v20, %v232_v19 }
 0x140   : > { %v236_v23 = vadd.f32 %v235_v21, %v234_v22 }
 0x142   : > { %v313_v24 = vmul.f32 -1.442695, %v236_v23 }
 0x144   : > { %345 = vpow2.f32 %v313_v24 }
 0x14e   : > { %v346_v25 = vpop.eup %345 }
 0x14f   : > { %v240_v26 = vadd.f32 1.0, %v346_v25 }
 0x151   : > { %347 = vrcp.f32 %v240_v26 }
 0x15b   : > { %v348_v27 = vpop.eup %347 }
 0x15c   : > { %244 = vst.msk [vmem:[%s194_s26] sm:$0x1] %vm243_vm3, %v348_v27 }
 0x15d PF: > { %s13_s14 = sadd.s32 1, %s371_s14   ;;  %s444_s12 = smov %s367_s13 }
 0x15e   : > { %p10_p5 = scmp.ge.s32.totalorder %s13_s14, 4   ;;  %s445_s13 = smov %s447_s15 }
 0x160   :  { %12 = sbr.rel (!%p10_p5) target bundleno = 2 (0x2), region = 70 }

</bundles_post_ra>
